<compile_context>
chip_gen: v6e
topology: v6e:2x2x1
jax: 0.10.0
libtpu: 0.0.40
codegen_flags: <defaults>
</compile_context>

<pallas_src>
import functools

import jax
import jax.numpy as jnp
from jax import lax
from jax.experimental import pallas as pl
from jax.experimental.pallas import tpu as pltpu

EPS = 1e-5
LANES = 128


# ----------------------------- glue (plain JAX) -----------------------------

def polar_pad_nhwc(x, p):
    """PolarPadding on NHWC: zero-pad width by p, circular-wrap height by p."""
    if p > 0:
        x = jnp.pad(x, ((0, 0), (0, 0), (p, p), (0, 0)))      # zero-pad width
        top = x[:, 0:p]
        bottom = x[:, x.shape[1] - p:x.shape[1]]
        x = jnp.concatenate([bottom, x, top], axis=1)          # wrap height
    return x


def _round_up(v, m):
    return (v + m - 1) // m * m


def _pick_tile_m(m):
    for c in (2048, 1024, 512, 256, 128, 64, 32, 16, 8):
        if m % c == 0:
            return c
    return m


# ------------------------------ Pallas kernels -------------------------------

def _conv_rows_kernel(x0_ref, x1_ref, x2_ref, w_ref,
                      conv_ref, sum_ref, ssq_ref, *, kw, wout):
    """One output row: implicit-GEMM 3x3 conv + per-row BN partial stats."""
    cp = w_ref.shape[-1]
    rows = (x0_ref, x1_ref, x2_ref)                       # 3 padded input rows
    acc = jnp.zeros((wout, cp), jnp.float32)
    for i in range(3):                                    # KH = 3 taps (rows)
        xr = rows[i][...].reshape(rows[i].shape[-2], rows[i].shape[-1])  # (Wp, Cin) bf16
        for j in range(kw):                               # KW taps (width shift)
            acc = acc + jnp.dot(xr[j:j + wout, :], w_ref[i * kw + j],
                                preferred_element_type=jnp.float32)
    conv_ref[...] = acc.reshape(conv_ref.shape)
    s = jnp.sum(acc, axis=0, keepdims=True)               # (1, Cp)
    sq = jnp.sum(acc * acc, axis=0, keepdims=True)
    sum_ref[...] = s.reshape(sum_ref.shape)
    ssq_ref[...] = sq.reshape(ssq_ref.shape)


def _bn_relu_kernel(conv_ref, scale_ref, shift_ref, o_ref, *, with_nonlinearity):
    """Per-channel affine normalization (+ReLU) over a lane-dense row tile."""
    y = conv_ref[...] * scale_ref[...] + shift_ref[...]
    if with_nonlinearity:
        y = jnp.maximum(y, 0.0)
    o_ref[...] = y


# --------------------------------- wrapper -----------------------------------

def conv_block_forward(x_nchw, params, *, padding=1, kernel_size=3,
                       with_nonlinearity=True):
    """ConvBlock forward. x: (N, Cin, H, W) f32. Returns (N, Cout, Hout, Wout) f32."""
    w, b, gamma, beta = params                            # w: (Cout, Cin, KH, KW)
    del b   # conv bias is exactly cancelled by BatchNorm's batch-mean subtraction
    cout, cin, kh, kw = w.shape
    assert kh == kernel_size and kw == kernel_size and kh == 3

    n = x_nchw.shape[0]
    cp = _round_up(cout, LANES)                           # lane-pad Cout -> 128k

    # NHWC internally (C on the 128-lane axis); polar pad; bf16 for the MXU.
    x = jnp.transpose(x_nchw, (0, 2, 3, 1))
    xp = polar_pad_nhwc(x, padding).astype(jnp.bfloat16)  # (N, Hp, Wp, Cin)
    _, hp, wp, _ = xp.shape
    hout = hp - kh + 1
    wout = wp - kw + 1

    # Per-tap weights: (KH*KW, Cin, Cp), lane-padded, bf16.
    w_taps = jnp.transpose(w, (2, 3, 1, 0)).reshape(kh * kw, cin, cout)
    w_taps = jnp.pad(w_taps, ((0, 0), (0, 0), (0, cp - cout))).astype(jnp.bfloat16)

    def _row_spec(i):
        return pl.BlockSpec((1, 1, wp, cin), lambda bi, hi: (bi, hi + i, 0, 0))

    kern1 = functools.partial(_conv_rows_kernel, kw=kw, wout=wout)
    conv, ssum, ssq = pl.pallas_call(
        kern1,
        grid=(n, hout),
        in_specs=[_row_spec(0), _row_spec(1), _row_spec(2),
                  pl.BlockSpec((kh * kw, cin, cp), lambda bi, hi: (0, 0, 0))],
        out_specs=(pl.BlockSpec((1, 1, wout, cp), lambda bi, hi: (bi, hi, 0, 0)),
                   pl.BlockSpec((1, 1, 1, cp), lambda bi, hi: (bi, hi, 0, 0)),
                   pl.BlockSpec((1, 1, 1, cp), lambda bi, hi: (bi, hi, 0, 0))),
        out_shape=(jax.ShapeDtypeStruct((n, hout, wout, cp), jnp.float32),
                   jax.ShapeDtypeStruct((n, hout, 1, cp), jnp.float32),
                   jax.ShapeDtypeStruct((n, hout, 1, cp), jnp.float32)),
        compiler_params=pltpu.CompilerParams(
            dimension_semantics=("parallel", "parallel")),
    )(xp, xp, xp, w_taps)

    # Exact full-batch BN statistics from the per-row partial sums (tiny reduce).
    m_total = n * hout * wout
    ch_sum = jnp.sum(ssum, axis=(0, 1, 2))                # (Cp,)
    ch_ssq = jnp.sum(ssq, axis=(0, 1, 2))
    mean = ch_sum * (1.0 / m_total)
    var = jnp.maximum(ch_ssq * (1.0 / m_total) - mean * mean, 0.0)  # biased var
    gamma_p = jnp.pad(gamma, (0, cp - cout))
    beta_p = jnp.pad(beta, (0, cp - cout))
    scale = gamma_p * lax.rsqrt(var + EPS)
    shift = beta_p - mean * scale

    # Pass 2: tiled normalize + ReLU on the lane-dense (M, Cp) slab.
    conv2d = conv.reshape(m_total, cp)
    tile_m = _pick_tile_m(m_total)
    kern2 = functools.partial(_bn_relu_kernel, with_nonlinearity=with_nonlinearity)
    out = pl.pallas_call(
        kern2,
        grid=(m_total // tile_m,),
        in_specs=[pl.BlockSpec((tile_m, cp), lambda i: (i, 0)),
                  pl.BlockSpec((1, cp), lambda i: (0, 0)),
                  pl.BlockSpec((1, cp), lambda i: (0, 0))],
        out_specs=pl.BlockSpec((tile_m, cp), lambda i: (i, 0)),
        out_shape=jax.ShapeDtypeStruct((m_total, cp), jnp.float32),
        compiler_params=pltpu.CompilerParams(dimension_semantics=("parallel",)),
    )(conv2d, scale.reshape(1, cp), shift.reshape(1, cp))

    # Slice off channel padding; return NCHW for PyTorch parity.
    out = out.reshape(n, hout, wout, cp)[..., :cout]
    return jnp.transpose(out, (0, 3, 1, 2))


# ------------------------------ f32 reference ---------------------------------

def _reference_forward(x, params, *, padding, with_nonlinearity):
    w, b, gamma, beta = params
    p = padding
    xp = jnp.pad(x, ((0, 0), (0, 0), (0, 0), (p, p)))
    xp = jnp.concatenate(
        [xp[:, :, xp.shape[2] - p:, :], xp, xp[:, :, :p, :]], axis=2)
    conv = lax.conv_general_dilated(xp, w, (1, 1), 'VALID',
                                    dimension_numbers=('NCHW', 'OIHW', 'NCHW'))
    conv = conv + b[None, :, None, None]
    mean = jnp.mean(conv, axis=(0, 2, 3), keepdims=True)
    var = jnp.mean((conv - mean) ** 2, axis=(0, 2, 3), keepdims=True)
    y = (conv - mean) * lax.rsqrt(var + EPS)
    y = y * gamma[None, :, None, None] + beta[None, :, None, None]
    if with_nonlinearity:
        y = jnp.maximum(y, 0.0)
    return y


# --------------------------------- main ---------------------------------------

if __name__ == "__main__":
    N, Cin, H, W = 2, 4, 16, 16
    Cout, K = 8, 3

    key = jax.random.PRNGKey(0)
    kx, kw_, kb = jax.random.split(key, 3)

    x = jax.random.normal(kx, (N, Cin, H, W), dtype=jnp.float32)

    # Deterministic parameter init (Conv2d weight/bias; BN gamma=1, beta=0).
    fan_in = Cin * K * K
    bound = 1.0 / (fan_in ** 0.5)
    conv_w = jax.random.uniform(kw_, (Cout, Cin, K, K), jnp.float32, -bound, bound)
    conv_b = jax.random.uniform(kb, (Cout,), jnp.float32, -bound, bound)
    gamma = jnp.ones((Cout,), jnp.float32)
    beta = jnp.zeros((Cout,), jnp.float32)
    params = (conv_w, conv_b, gamma, beta)

    y = conv_block_forward(x, params, padding=1, kernel_size=3,
                           with_nonlinearity=True)
    jax.block_until_ready(y)
    assert y.shape == (N, Cout, H, W)

    # Correctness vs f32 reference (bf16 MXU inputs -> loose tolerance).
    y_ref = _reference_forward(x, params, padding=1, with_nonlinearity=True)
    err = float(jnp.max(jnp.abs(y - y_ref)))
    assert err < 0.2, f"max abs error {err}"

    print("KERNEL_OK")
</pallas_src>

<mosaic_0001>
module attributes {stable_mosaic.version = 11 : i64} {
  func.func @_conv_rows_kernel(%arg0: i32, %arg1: i32, %arg2: memref<1x1x18x4xbf16, #tpu.memory_space<vmem>>, %arg3: memref<1x1x18x4xbf16, #tpu.memory_space<vmem>>, %arg4: memref<1x1x18x4xbf16, #tpu.memory_space<vmem>>, %arg5: memref<9x4x128xbf16, #tpu.memory_space<vmem>>, %arg6: memref<1x1x16x128xf32, #tpu.memory_space<vmem>>, %arg7: memref<1x1x1x128xf32, #tpu.memory_space<vmem>>, %arg8: memref<1x1x1x128xf32, #tpu.memory_space<vmem>>) attributes {dimension_semantics = [#tpu.dimension_semantics<parallel>, #tpu.dimension_semantics<parallel>], iteration_bounds = array<i64: 2, 16>, scalar_prefetch = 0 : i64, scratch_operands = 0 : i64, tpu.core_type = #tpu.core_type<tc>, window_params = [{transform_indices = @transform_0, window_bounds = array<i64: 1, 1, 18, 4>}, {transform_indices = @transform_1, window_bounds = array<i64: 1, 1, 18, 4>}, {transform_indices = @transform_2, window_bounds = array<i64: 1, 1, 18, 4>}, {pipeline_mode = #tpu.pipeline_mode<synchronous>, transform_indices = @transform_3, window_bounds = array<i64: 9, 4, 128>}, {transform_indices = @transform_4, window_bounds = array<i64: 1, 1, 16, 128>}, {transform_indices = @transform_5, window_bounds = array<i64: 1, 1, 1, 128>}, {transform_indices = @transform_6, window_bounds = array<i64: 1, 1, 1, 128>}]} {
    %cst = arith.constant 0.000000e+00 : f32
    %0 = vector.broadcast %cst : f32 to vector<16x128xf32>
    %c0 = arith.constant 0 : index
    %c0_0 = arith.constant 0 : index
    %c0_1 = arith.constant 0 : index
    %c0_2 = arith.constant 0 : index
    %1 = vector.load %arg2[%c0, %c0_0, %c0_1, %c0_2] : memref<1x1x18x4xbf16, #tpu.memory_space<vmem>>, vector<1x1x18x4xbf16>
    %2 = vector.shape_cast %1 : vector<1x1x18x4xbf16> to vector<18x4xbf16>
    %3 = vector.extract_strided_slice %2 {offsets = [0, 0], sizes = [16, 4], strides = [1, 1]} : vector<18x4xbf16> to vector<16x4xbf16>
    %c0_3 = arith.constant 0 : index
    %c0_4 = arith.constant 0 : index
    %c0_5 = arith.constant 0 : index
    %4 = vector.load %arg5[%c0_3, %c0_4, %c0_5] : memref<9x4x128xbf16, #tpu.memory_space<vmem>>, vector<1x4x128xbf16>
    %5 = vector.shape_cast %4 : vector<1x4x128xbf16> to vector<4x128xbf16>
    %cst_6 = arith.constant dense<0.000000e+00> : vector<16x128xf32>
    %6 = tpu.matmul %3, %5, %cst_6 {dimension_numbers = #tpu.dot_dimension_numbers<[1], [0], [0], [1], [0, 0, 1, 1], [], []>} : vector<16x4xbf16>, vector<4x128xbf16>, vector<16x128xf32> -> vector<16x128xf32>
    %7 = arith.addf %0, %6 : vector<16x128xf32>
    %8 = vector.extract_strided_slice %2 {offsets = [1, 0], sizes = [16, 4], strides = [1, 1]} : vector<18x4xbf16> to vector<16x4xbf16>
    %c1 = arith.constant 1 : index
    %c0_7 = arith.constant 0 : index
    %c0_8 = arith.constant 0 : index
    %9 = vector.load %arg5[%c1, %c0_7, %c0_8] : memref<9x4x128xbf16, #tpu.memory_space<vmem>>, vector<1x4x128xbf16>
    %10 = vector.shape_cast %9 : vector<1x4x128xbf16> to vector<4x128xbf16>
    %cst_9 = arith.constant dense<0.000000e+00> : vector<16x128xf32>
    %11 = tpu.matmul %8, %10, %cst_9 {dimension_numbers = #tpu.dot_dimension_numbers<[1], [0], [0], [1], [0, 0, 1, 1], [], []>} : vector<16x4xbf16>, vector<4x128xbf16>, vector<16x128xf32> -> vector<16x128xf32>
    %12 = arith.addf %7, %11 : vector<16x128xf32>
    %13 = vector.extract_strided_slice %2 {offsets = [2, 0], sizes = [16, 4], strides = [1, 1]} : vector<18x4xbf16> to vector<16x4xbf16>
    %c2 = arith.constant 2 : index
    %c0_10 = arith.constant 0 : index
    %c0_11 = arith.constant 0 : index
    %14 = vector.load %arg5[%c2, %c0_10, %c0_11] : memref<9x4x128xbf16, #tpu.memory_space<vmem>>, vector<1x4x128xbf16>
    %15 = vector.shape_cast %14 : vector<1x4x128xbf16> to vector<4x128xbf16>
    %cst_12 = arith.constant dense<0.000000e+00> : vector<16x128xf32>
    %16 = tpu.matmul %13, %15, %cst_12 {dimension_numbers = #tpu.dot_dimension_numbers<[1], [0], [0], [1], [0, 0, 1, 1], [], []>} : vector<16x4xbf16>, vector<4x128xbf16>, vector<16x128xf32> -> vector<16x128xf32>
    %17 = arith.addf %12, %16 : vector<16x128xf32>
    %c0_13 = arith.constant 0 : index
    %c0_14 = arith.constant 0 : index
    %c0_15 = arith.constant 0 : index
    %c0_16 = arith.constant 0 : index
    %18 = vector.load %arg3[%c0_13, %c0_14, %c0_15, %c0_16] : memref<1x1x18x4xbf16, #tpu.memory_space<vmem>>, vector<1x1x18x4xbf16>
    %19 = vector.shape_cast %18 : vector<1x1x18x4xbf16> to vector<18x4xbf16>
    %20 = vector.extract_strided_slice %19 {offsets = [0, 0], sizes = [16, 4], strides = [1, 1]} : vector<18x4xbf16> to vector<16x4xbf16>
    %c3 = arith.constant 3 : index
    %c0_17 = arith.constant 0 : index
    %c0_18 = arith.constant 0 : index
    %21 = vector.load %arg5[%c3, %c0_17, %c0_18] : memref<9x4x128xbf16, #tpu.memory_space<vmem>>, vector<1x4x128xbf16>
    %22 = vector.shape_cast %21 : vector<1x4x128xbf16> to vector<4x128xbf16>
    %cst_19 = arith.constant dense<0.000000e+00> : vector<16x128xf32>
    %23 = tpu.matmul %20, %22, %cst_19 {dimension_numbers = #tpu.dot_dimension_numbers<[1], [0], [0], [1], [0, 0, 1, 1], [], []>} : vector<16x4xbf16>, vector<4x128xbf16>, vector<16x128xf32> -> vector<16x128xf32>
    %24 = arith.addf %17, %23 : vector<16x128xf32>
    %25 = vector.extract_strided_slice %19 {offsets = [1, 0], sizes = [16, 4], strides = [1, 1]} : vector<18x4xbf16> to vector<16x4xbf16>
    %c4 = arith.constant 4 : index
    %c0_20 = arith.constant 0 : index
    %c0_21 = arith.constant 0 : index
    %26 = vector.load %arg5[%c4, %c0_20, %c0_21] : memref<9x4x128xbf16, #tpu.memory_space<vmem>>, vector<1x4x128xbf16>
    %27 = vector.shape_cast %26 : vector<1x4x128xbf16> to vector<4x128xbf16>
    %cst_22 = arith.constant dense<0.000000e+00> : vector<16x128xf32>
    %28 = tpu.matmul %25, %27, %cst_22 {dimension_numbers = #tpu.dot_dimension_numbers<[1], [0], [0], [1], [0, 0, 1, 1], [], []>} : vector<16x4xbf16>, vector<4x128xbf16>, vector<16x128xf32> -> vector<16x128xf32>
    %29 = arith.addf %24, %28 : vector<16x128xf32>
    %30 = vector.extract_strided_slice %19 {offsets = [2, 0], sizes = [16, 4], strides = [1, 1]} : vector<18x4xbf16> to vector<16x4xbf16>
    %c5 = arith.constant 5 : index
    %c0_23 = arith.constant 0 : index
    %c0_24 = arith.constant 0 : index
    %31 = vector.load %arg5[%c5, %c0_23, %c0_24] : memref<9x4x128xbf16, #tpu.memory_space<vmem>>, vector<1x4x128xbf16>
    %32 = vector.shape_cast %31 : vector<1x4x128xbf16> to vector<4x128xbf16>
    %cst_25 = arith.constant dense<0.000000e+00> : vector<16x128xf32>
    %33 = tpu.matmul %30, %32, %cst_25 {dimension_numbers = #tpu.dot_dimension_numbers<[1], [0], [0], [1], [0, 0, 1, 1], [], []>} : vector<16x4xbf16>, vector<4x128xbf16>, vector<16x128xf32> -> vector<16x128xf32>
    %34 = arith.addf %29, %33 : vector<16x128xf32>
    %c0_26 = arith.constant 0 : index
    %c0_27 = arith.constant 0 : index
    %c0_28 = arith.constant 0 : index
    %c0_29 = arith.constant 0 : index
    %35 = vector.load %arg4[%c0_26, %c0_27, %c0_28, %c0_29] : memref<1x1x18x4xbf16, #tpu.memory_space<vmem>>, vector<1x1x18x4xbf16>
    %36 = vector.shape_cast %35 : vector<1x1x18x4xbf16> to vector<18x4xbf16>
    %37 = vector.extract_strided_slice %36 {offsets = [0, 0], sizes = [16, 4], strides = [1, 1]} : vector<18x4xbf16> to vector<16x4xbf16>
    %c6 = arith.constant 6 : index
    %c0_30 = arith.constant 0 : index
    %c0_31 = arith.constant 0 : index
    %38 = vector.load %arg5[%c6, %c0_30, %c0_31] : memref<9x4x128xbf16, #tpu.memory_space<vmem>>, vector<1x4x128xbf16>
    %39 = vector.shape_cast %38 : vector<1x4x128xbf16> to vector<4x128xbf16>
    %cst_32 = arith.constant dense<0.000000e+00> : vector<16x128xf32>
    %40 = tpu.matmul %37, %39, %cst_32 {dimension_numbers = #tpu.dot_dimension_numbers<[1], [0], [0], [1], [0, 0, 1, 1], [], []>} : vector<16x4xbf16>, vector<4x128xbf16>, vector<16x128xf32> -> vector<16x128xf32>
    %41 = arith.addf %34, %40 : vector<16x128xf32>
    %42 = vector.extract_strided_slice %36 {offsets = [1, 0], sizes = [16, 4], strides = [1, 1]} : vector<18x4xbf16> to vector<16x4xbf16>
    %c7 = arith.constant 7 : index
    %c0_33 = arith.constant 0 : index
    %c0_34 = arith.constant 0 : index
    %43 = vector.load %arg5[%c7, %c0_33, %c0_34] : memref<9x4x128xbf16, #tpu.memory_space<vmem>>, vector<1x4x128xbf16>
    %44 = vector.shape_cast %43 : vector<1x4x128xbf16> to vector<4x128xbf16>
    %cst_35 = arith.constant dense<0.000000e+00> : vector<16x128xf32>
    %45 = tpu.matmul %42, %44, %cst_35 {dimension_numbers = #tpu.dot_dimension_numbers<[1], [0], [0], [1], [0, 0, 1, 1], [], []>} : vector<16x4xbf16>, vector<4x128xbf16>, vector<16x128xf32> -> vector<16x128xf32>
    %46 = arith.addf %41, %45 : vector<16x128xf32>
    %47 = vector.extract_strided_slice %36 {offsets = [2, 0], sizes = [16, 4], strides = [1, 1]} : vector<18x4xbf16> to vector<16x4xbf16>
    %c8 = arith.constant 8 : index
    %c0_36 = arith.constant 0 : index
    %c0_37 = arith.constant 0 : index
    %48 = vector.load %arg5[%c8, %c0_36, %c0_37] : memref<9x4x128xbf16, #tpu.memory_space<vmem>>, vector<1x4x128xbf16>
    %49 = vector.shape_cast %48 : vector<1x4x128xbf16> to vector<4x128xbf16>
    %cst_38 = arith.constant dense<0.000000e+00> : vector<16x128xf32>
    %50 = tpu.matmul %47, %49, %cst_38 {dimension_numbers = #tpu.dot_dimension_numbers<[1], [0], [0], [1], [0, 0, 1, 1], [], []>} : vector<16x4xbf16>, vector<4x128xbf16>, vector<16x128xf32> -> vector<16x128xf32>
    %51 = arith.addf %46, %50 : vector<16x128xf32>
    %52 = vector.shape_cast %51 : vector<16x128xf32> to vector<1x1x16x128xf32>
    %c0_39 = arith.constant 0 : index
    %c0_40 = arith.constant 0 : index
    %c0_41 = arith.constant 0 : index
    %c0_42 = arith.constant 0 : index
    %53 = vector.load %arg6[%c0_39, %c0_40, %c0_41, %c0_42] : memref<1x1x16x128xf32, #tpu.memory_space<vmem>>, vector<1x1x16x128xf32>
    tpu.vector_store %arg6[%c0_39, %c0_40, %c0_41, %c0_42], %52 {strides = array<i32>} : memref<1x1x16x128xf32, #tpu.memory_space<vmem>>, vector<1x1x16x128xf32>,
    %cst_43 = arith.constant dense<0.000000e+00> : vector<128xf32>
    %54 = vector.multi_reduction <add>, %51, %cst_43 [0] : vector<16x128xf32> to vector<128xf32>
    %55 = vector.shape_cast %54 : vector<128xf32> to vector<1x128xf32>
    %56 = arith.mulf %51, %51 : vector<16x128xf32>
    %cst_44 = arith.constant dense<0.000000e+00> : vector<128xf32>
    %57 = vector.multi_reduction <add>, %56, %cst_44 [0] : vector<16x128xf32> to vector<128xf32>
    %58 = vector.shape_cast %57 : vector<128xf32> to vector<1x128xf32>
    %59 = vector.shape_cast %55 : vector<1x128xf32> to vector<1x1x1x128xf32>
    %c0_45 = arith.constant 0 : index
    %c0_46 = arith.constant 0 : index
    %c0_47 = arith.constant 0 : index
    %c0_48 = arith.constant 0 : index
    %60 = vector.load %arg7[%c0_45, %c0_46, %c0_47, %c0_48] : memref<1x1x1x128xf32, #tpu.memory_space<vmem>>, vector<1x1x1x128xf32>
    tpu.vector_store %arg7[%c0_45, %c0_46, %c0_47, %c0_48], %59 {strides = array<i32>} : memref<1x1x1x128xf32, #tpu.memory_space<vmem>>, vector<1x1x1x128xf32>,
    %61 = vector.shape_cast %58 : vector<1x128xf32> to vector<1x1x1x128xf32>
    %c0_49 = arith.constant 0 : index
    %c0_50 = arith.constant 0 : index
    %c0_51 = arith.constant 0 : index
    %c0_52 = arith.constant 0 : index
    %62 = vector.load %arg8[%c0_49, %c0_50, %c0_51, %c0_52] : memref<1x1x1x128xf32, #tpu.memory_space<vmem>>, vector<1x1x1x128xf32>
    tpu.vector_store %arg8[%c0_49, %c0_50, %c0_51, %c0_52], %61 {strides = array<i32>} : memref<1x1x1x128xf32, #tpu.memory_space<vmem>>, vector<1x1x1x128xf32>,
    return
  }
  func.func @transform_0(%arg0: i32, %arg1: i32) -> (i32, i32, i32, i32) {
    %c0_i32 = arith.constant 0 : i32
    %0 = arith.addi %arg1, %c0_i32 : i32
    %c0_i32_0 = arith.constant 0 : i32
    %c0_i32_1 = arith.constant 0 : i32
    %c0_i32_2 = arith.constant 0 : i32
    return %arg0, %0, %c0_i32_0, %c0_i32_1 : i32, i32, i32, i32
  }
  func.func @transform_1(%arg0: i32, %arg1: i32) -> (i32, i32, i32, i32) {
    %c1_i32 = arith.constant 1 : i32
    %0 = arith.addi %arg1, %c1_i32 : i32
    %c0_i32 = arith.constant 0 : i32
    %c0_i32_0 = arith.constant 0 : i32
    %c0_i32_1 = arith.constant 0 : i32
    return %arg0, %0, %c0_i32, %c0_i32_0 : i32, i32, i32, i32
  }
  func.func @transform_2(%arg0: i32, %arg1: i32) -> (i32, i32, i32, i32) {
    %c2_i32 = arith.constant 2 : i32
    %0 = arith.addi %arg1, %c2_i32 : i32
    %c0_i32 = arith.constant 0 : i32
    %c0_i32_0 = arith.constant 0 : i32
    %c0_i32_1 = arith.constant 0 : i32
    return %arg0, %0, %c0_i32, %c0_i32_0 : i32, i32, i32, i32
  }
  func.func @transform_3(%arg0: i32, %arg1: i32) -> (i32, i32, i32) {
    %c0_i32 = arith.constant 0 : i32
    %c0_i32_0 = arith.constant 0 : i32
    %c0_i32_1 = arith.constant 0 : i32
    %c0_i32_2 = arith.constant 0 : i32
    return %c0_i32, %c0_i32_0, %c0_i32_1 : i32, i32, i32
  }
  func.func @transform_4(%arg0: i32, %arg1: i32) -> (i32, i32, i32, i32) {
    %c0_i32 = arith.constant 0 : i32
    %c0_i32_0 = arith.constant 0 : i32
    %c0_i32_1 = arith.constant 0 : i32
    return %arg0, %arg1, %c0_i32, %c0_i32_0 : i32, i32, i32, i32
  }
  func.func @transform_5(%arg0: i32, %arg1: i32) -> (i32, i32, i32, i32) {
    %c0_i32 = arith.constant 0 : i32
    %c0_i32_0 = arith.constant 0 : i32
    %c0_i32_1 = arith.constant 0 : i32
    return %arg0, %arg1, %c0_i32, %c0_i32_0 : i32, i32, i32, i32
  }
  func.func @transform_6(%arg0: i32, %arg1: i32) -> (i32, i32, i32, i32) {
    %c0_i32 = arith.constant 0 : i32
    %c0_i32_0 = arith.constant 0 : i32
    %c0_i32_1 = arith.constant 0 : i32
    return %arg0, %arg1, %c0_i32, %c0_i32_0 : i32, i32, i32, i32
  }
}

</mosaic_0001>

<bundles_post_ra>
// kernel: tpu_custom_call.1
= control target key start
LH: loop header
LB: loop body
LE: loop exit
PB: predicated region body
PF: predicated region fallthrough
CT: control target
= control target key end

     0   :  { %s1883_s0 = inlined_call_operand.vmem [shape: bf16[2,18,18,4], index: 0, kind: input, shape index: {}]   ;;  %s1884_s1 = inlined_call_operand.vmem [shape: bf16[2,18,18,4], index: 1, kind: input, shape index: {}]   ;;  %s1885_s2 = inlined_call_operand.vmem [shape: bf16[2,18,18,4], index: 2, kind: input, shape index: {}]   ;;  %s1886_s3 = inlined_call_operand.vmem [shape: bf16[9,4,128], index: 3, kind: input, shape index: {}]   ;;  %s1887_s4 = inlined_call_operand.hbm [shape: f32[2,16,16,128], index: 4, kind: output, shape index: {0}]   ;;  %s1888_s5 = inlined_call_operand.hbm [shape: f32[2,16,1,128], index: 5, kind: output, shape index: {1}]   ;;  %s1889_s6 = inlined_call_operand.hbm [shape: f32[2,16,1,128], index: 6, kind: output, shape index: {2}]  }
   0x1   :  { %1895 = sst [smem:[#allocation11_spill]] %s1883_s0 }
   0x2   :  { %12 = vsyncpa [#allocation3], 0 }
   0x3   :  { %14 = vsyncpa [#allocation3 + $0x1], 0 }
   0x4   :  { %15 = vsyncpa [#allocation5], 0 }
   0x5   :  { %17 = vsyncpa [#allocation5 + $0x1], 0  ;;  %s1573_s21 = smov 0   ;;  %s1575_s22 = smov 0  }
   0x6   :  { %s1577_s23 = smov 0   ;;  %s1579_s24 = smov 0  }
   0x7   :  { %s1581_s25 = smov 0   ;;  %s1583_s26 = smov 0  }
   0x8   :  { %s1585_s27 = smov 0   ;;  %s1587_s28 = smov 0  }
   0x9 LB: > { %s1891_s29 = sadd.s32 4294967295, %s1529_s28   ;;  %s1890_s30 = sadd.s32 4294967294, %s1529_s28   ;;  %s1529_s28 = sphi %s1587_s28, %s23_s28   ;;  %s1525_s27 = sphi %s1585_s27, %s1912_s27   ;;  %s1521_s26 = sphi %s1583_s26, %s1911_s26   ;;  %s1517_s25 = sphi %s1581_s25, %s1910_s25   ;;  %s1513_s24 = sphi %s1579_s24, %s1909_s24   ;;  %s1509_s23 = sphi %s1577_s23, %s1908_s23   ;;  %s1505_s22 = sphi %s1575_s22, %s1907_s22   ;;  %s1501_s21 = sphi %s1573_s21, %s1906_s21  }
   0xa   : > { %s32_s7 = sadd.s32 1, %s1521_s26  ;;  %s35_s8 = sadd.s32 1, %s1525_s27 }
   0xb   : > { %p33_p0 = scmp.ge.s32.totalorder %s32_s7, 16  ;;  %p163_p1 = scmp.ne.s32.totalorder %s1509_s23, %s1505_s22 }
   0xc   : > { %p164_p2 = scmp.eq.s32.totalorder %s1891_s29, 31  ;;  %p169_p5 = scmp.ne.s32.totalorder %s1505_s22, %s1501_s21 }
   0xd   : > { %s1914_s7 = smov (%p33_p0, %s32_s7), 0  ;;  %s1916_s8 = smov (!%p33_p0, %s35_s8), %s1525_s27 }
   0xe   : > { %1896 = sst [smem:[#allocation9_spill]] %s1914_s7  ;;  %s149_s9 = ssub.s32 %s1521_s26, %s1914_s7 }
   0xf   : > { %p1626_p3 = por %p164_p2, %p163_p1  ;;  %p37_p4 = scmp.ge.s32.totalorder %s1916_s8, 2 }
  0x10   : > { %p170_p6 = scmp.eq.s32.totalorder %s1890_s30, 31  ;;  %p1176_p7 = scmp.ge.s32.totalorder %s1529_s28, 1 }
  0x11   : > { %s1918_s8 = smov (%p37_p4, %s1916_s8), 0  ;;  %p287_p9 = scmp.lt.s32.totalorder %s1529_s28, 33 }
  0x12   : > { %1898 = sst [smem:[#allocation10_spill]] %s1918_s8  ;;  %p1637_p8 = por %p170_p6, %p169_p5 }
  0x13   : > { %s148_s12 = ssub.s32 %s1525_s27, %s1918_s8  ;;  %s153_s13 = sadd.s32 1, %s1509_s23 }
  0x14   : > { %s150_s14 = sor.u32 %s149_s9, %s148_s12  ;;  %p288_p10 = pnand %p1176_p7, %p287_p9 }
  0x15   : > { %p151_p11 = scmp.eq.s32.totalorder %s150_s14, 0  ;;  %p349_p12 = scmp.lt.s32.totalorder (!%p288_p10), %s1517_s25, 1 }
  0x16   : > { %291 = sbr.rel (%p288_p10) target bundleno = 338 (0x152), region = 36  ;;  %p351_p13 = scmp.lt.s32.totalorder (!%p288_p10), %s1513_s24, 17 }
  0x17   : > { %s1646_s15 = scalar_select %p151_p11, %s1509_s23, %s153_s13  }
  0x18   : > { %s358_s13 = sadd.s32 (!%p288_p10), 1, %s1513_s24  ;;  %s369_s16 = sadd.s32 (!%p288_p10), 2, %s1513_s24 }
  0x19   : > { %p361_p0 = scmp.lt.s32.totalorder (!%p288_p10), %s358_s13, 17  ;;  %p372_p1 = scmp.lt.s32.totalorder (!%p288_p10), %s369_s16, 17 }
  0x1a   : > { %s1900_s0 = sld [smem:[#allocation11_spill]] (!%p288_p10)  ;;  %s1206_s8 = sshll.u32 (!%p288_p10), %s1517_s25, 5 }
  0x1b   : > { %v1181_v0 = vld [vmem:[%s1886_s3 + $0x2] sm:$0x3]  ;;  %vm412_vm0 = vcmask 1041408   ;;  %v384_v1 = vld [vmem:[%s1886_s3] sm:$0x3]  ;;  %v1531_v2 = vmov 0.0  }
  0x1c   : > { %1232 = vmatprep.subr.bf16.mxu0 %v1531_v2  ;;  %v414_v3 = vsel %vm412_vm0, %v1181_v0, 0  ;;  %1238 = vmatprep.subr.bf16.mxu1 %v1531_v2  ;;  %v460_v4 = vsel %vm412_vm0, %v384_v1, 0  ;;  %vm1532_vm1 = vmmov 0   ;;  %s350_s20 = scalar_select %p349_p12, %s1517_s25, 1  ;;  %v1188_v5 = vld [vmem:[%s1886_s3 + $0x6] sm:$0x3] }
  0x1d   : > { %1233 = vmatpush3.bf16.msra.mxu0 %v414_v3  ;;  %1239 = vmatpush3.bf16.msra.mxu1 %v460_v4  ;;  %s352_s9 = scalar_select %p351_p13, %s1513_s24, 17  ;;  %vm408_vm2 = vcmask 31744   ;;  %v572_v8 = vsel %vm412_vm0, %v1188_v5, 0  ;;  %v1186_v14 = vld [vmem:[%s1886_s3 + $0x4] sm:$0x3]  ;;  %vm505_vm4 = vcmask 1046528  }
  0x1e   : > { %1234 = vmatprep.mubr.msk.bf16.mxu0 %vm1532_vm1, %v1531_v2  ;;  %1240 = vmatprep.mubr.msk.bf16.mxu1 %vm1532_vm1, %v1531_v2  ;;  %s1668_s12 = smul.u32 54, %s350_s20  ;;  %s1920_s13 = smov (!%p361_p0, %s358_s13), 17  ;;  %vm395_vm3 = vsmask.f32 7424  ;;  %v1194_v15 = vld [vmem:[%s1886_s3 + $0xa] sm:$0x3] }
  0x1f   : > { %1244 = vmatprep.subr.bf16.mxu0 %v1531_v2  ;;  %1250 = vmatprep.subr.bf16.mxu1 %v1531_v2  ;;  %s1286_s14 = smul.u32 3, %s352_s9  ;;  %s1922_s16 = smov (!%p372_p1, %s369_s16), 17  ;;  %v513_v17 = vsel %vm412_vm0, %v1186_v14, 0  ;;  %v691_v20 = vsel %vm412_vm0, %v1194_v15, 0  ;;  %v1191_v26 = vld [vmem:[%s1886_s3 + $0x8] sm:$0x3] }
  0x20   : > { %s1288_s30 = smul.u32 3, %s1920_s13  ;;  %v1199_v35 = vld [vmem:[%s1886_s3 + $0xe] sm:$0x3]  ;;  %v637_v36 = vsel %vm412_vm0, %v1191_v26, 0  ;;  %v1196_v44 = vld [vmem:[%s1886_s3 + $0xc] sm:$0x3] }
  0x21   : > { %s355_s17 = sadd.s32 %s1668_s12, %s1286_s14  ;;  %s1289_s29 = smul.u32 3, %s1922_s16  ;;  %v815_v41 = vsel %vm412_vm0, %v1199_v35, 0  ;;  %v750_v48 = vsel %vm412_vm0, %v1196_v44, 0  ;;  %v1202_v50 = vld [vmem:[%s1886_s3 + $0x10] sm:$0x3] }
  0x22   : > { %s1178_s18 = sshll.u32 %s355_s17, 2  ;;  %s365_s20 = sadd.s32 %s1288_s30, %s1668_s12  ;;  %v869_v51 = vsel %vm412_vm0, %v1202_v50, 0 }
  0x23   : > { %s357_s7 = scalar_lea.vmem %s1900_s0, %s1178_s18  ;;  %s1179_s9 = sshll.u32 %s365_s20, 2 }
  0x24   : > { %v1375_v6 = vld [vmem:[%s357_s7] sm:$0xff]   ;;  %v1376_v7 = vld [vmem:[%s357_s7 + $0x8] ss:$0 sps:$4 sm:$0x11]   ;;  %s376_s13 = sadd.s32 %s1289_s29, %s1668_s12  ;;  %s367_s16 = scalar_lea.vmem %s1884_s1, %s1179_s9 }
  0x25   : > { %v397_v9 = vshrl.u32 %v1375_v6, 16  ;;  %v399_v10 = vshll.u32 %v1375_v6, 16  ;;  %v404_v11 = vshll.u32 %v1376_v7, 16  ;;  %1241 = vmatmul.mubr.msk.bf16.vlgmr.msra.gmra.mxu1 %vm408_vm2, %v1375_v6  ;;  %s1180_s0 = sshll.u32 %s376_s13, 2  ;;  %v1377_v18 = vld [vmem:[%s367_s16] sm:$0xff]   ;;  %v506_v22 = vrot.slane %v1375_v6, 1 }
  0x26   : > { %1251 = vmatpush3.bf16.msra.mxu1 %v572_v8  ;;  %1252 = vmatprep.mubr.msk.bf16.mxu1 %vm1532_vm1, %v1531_v2  ;;  %s378_s7 = scalar_lea.vmem %s1885_s2, %s1180_s0  ;;  %v1378_v23 = vld [vmem:[%s367_s16 + $0x8] ss:$0 sps:$4 sm:$0x11]   ;;  %v507_v24 = vrot.slane %v1376_v7, 1  ;;  %v624_v25 = vshll.u32 %v1377_v18, 16  ;;  %v684_v27 = vrot.slane %v1377_v18, 1 }
  0x27   : > { %v401_v12 = vrot.slane %v399_v10, 1  ;;  %v406_v13 = vrot.slane %v404_v11, 1  ;;  %1262 = vmatprep.subr.bf16.mxu1 %v1531_v2  ;;  %v1379_v21 = vld [vmem:[%s378_s7] sm:$0xff]   ;;  %v685_v28 = vrot.slane %v1378_v23, 1  ;;  %v622_v32 = vshrl.u32 %v1377_v18, 16  ;;  %s1747_s18 = sand.u32 1, %s1505_s22  }
  0x28   : > { %v1380_v29 = vld [vmem:[%s378_s7 + $0x8] ss:$0 sps:$4 sm:$0x11]   ;;  %v802_v30 = vshll.u32 %v1379_v21, 16  ;;  %v508_v31 = vsel %vm505_vm4, %v506_v22, %v507_v24  ;;  %v626_v33 = vrot.slane %v624_v25, 1  ;;  %v629_v34 = vshll.u32 %v1378_v23, 16 }
  0x29   : > { %v402_v16 = vor.u32 %v401_v12, %v397_v9  ;;  %v686_v37 = vsel %vm505_vm4, %v684_v27, %v685_v28  ;;  %v800_v38 = vshrl.u32 %v1379_v21, 16  ;;  %v807_v40 = vshll.u32 %v1380_v29, 16  ;;  %s1177_s19 = sshll.u32 %s1747_s18, 4  ;;  %s1205_s16 = sshll.u32 %s1513_s24, 1 }
  0x2a   : > { %v804_v39 = vrot.slane %v802_v30, 1  ;;  %v627_v42 = vor.u32 %v626_v33, %v622_v32  ;;  %v631_v43 = vrot.slane %v629_v34, 1  ;;  %v862_v52 = vrot.slane %v1379_v21, 1  ;;  %s955_s30 = sadd.s32 %s1206_s8, %s1205_s16  ;;  %s336_s7 = scalar_lea.vmem [#allocation2], %s1177_s19 }
  0x2b   : > { %v407_v19 = vsel %vm395_vm3, %v402_v16, %v406_v13  ;;  %v809_v46 = vrot.slane %v807_v40, 1  ;;  %v863_v53 = vrot.slane %v1380_v29, 1  ;;  %s958_s0 = sshll.u32 %s336_s7, 4  ;;  %s1207_s12 = sshll.u32 %s955_s30, 7  ;;  %s1752_s0 = int_to_ptr.vmem [resolvable:$true] %s958_s0 }
  0x2c   : > { %1235 = vmatmul.mubr.msk.bf16.vlgmr.msra.gmra.mxu0 %vm408_vm2, %v407_v19  ;;  %v805_v45 = vor.u32 %v804_v39, %v800_v38  ;;  %v632_v47 = vsel %vm395_vm3, %v627_v42, %v631_v43  ;;  %s1757_s9 = scalar_lea.hbm %s1887_s4, %s1207_s12  ;;  %s935_s14 = scalar_lea.sflag [#allocation3], %s1747_s18 }
  0x2d   : > { %1245 = vmatpush3.bf16.msra.mxu0 %v513_v17  ;;  %1246 = vmatprep.mubr.msk.bf16.mxu0 %vm1532_vm1, %v1531_v2  ;;  %v864_v54 = vsel %vm505_vm4, %v862_v52, %v863_v53  ;;  %s1381_s17 = scalar_lea.vmem %s1752_s0, 256  ;;  %s1533_s13 = smov [#allocation2]  }
  0x2e   : > { %1256 = vmatprep.subr.bf16.mxu0 %v1531_v2  ;;  %1253 = vmatmul.mubr.msk.bf16.vlgmr.msra.gmra.mxu1 %vm408_vm2, %v1377_v18  ;;  %v810_v49 = vsel %vm395_vm3, %v805_v45, %v809_v46  ;;  %p1382_p2 = scmp.ne.s32.totalorder %s1752_s0, %s1381_s17  ;;  %s1385_s19 = sshll.u32 %s1533_s13, 4  ;;  %s1386_s19 = int_to_ptr.vmem [resolvable:$false] %s1385_s19 }
  0x2f   : > { %1263 = vmatpush3.bf16.msra.mxu1 %v691_v20  ;;  %1264 = vmatprep.mubr.msk.bf16.mxu1 %vm1532_vm1, %v1531_v2  ;;  %s1387_s16 = scalar_lea.vmem %s1386_s19, 512  ;;  %p1388_p6 = scmp.lt.s32.totalorder %s1752_s0, %s1386_s19 }
  0x30   : > { %1274 = vmatprep.subr.bf16.mxu1 %v1531_v2  ;;  %p1383_p4 = pnand %p1382_p2, %p1626_p3  ;;  %p1389_p7 = scmp.lt.s32.totalorder %s1387_s16, %s1381_s17 }
  0x32   : > { %p1384_p5 = pneg %p1383_p4  ;;  %p1390_p9 = por %p1389_p7, %p1388_p6 }
  0x34   : > { %1247 = vmatmul.mubr.msk.bf16.vlgmr.msra.gmra.mxu0 %vm408_vm2, %v508_v31  ;;  %p1391_p10 = pnand %p1390_p9, %p1384_p5 }
  0x35   : > { %1257 = vmatpush3.bf16.msra.mxu0 %v637_v36  ;;  %1258 = vmatprep.mubr.msk.bf16.mxu0 %vm1532_vm1, %v1531_v2 }
  0x36   : > { %1268 = vmatprep.subr.bf16.mxu0 %v1531_v2  ;;  %1265 = vmatmul.mubr.msk.bf16.vlgmr.msra.gmra.mxu1 %vm408_vm2, %v686_v37 }
  0x37   : > { %1275 = vmatpush3.bf16.msra.mxu1 %v815_v41  ;;  %1276 = vmatprep.mubr.msk.bf16.mxu1 %vm1532_vm1, %v1531_v2 }
  0x3c   : > { %1259 = vmatmul.mubr.msk.bf16.vlgmr.msra.gmra.mxu0 %vm408_vm2, %v632_v47 }
  0x3d   : > { %1269 = vmatpush3.bf16.msra.mxu0 %v750_v48  ;;  %1270 = vmatprep.mubr.msk.bf16.mxu0 %vm1532_vm1, %v1531_v2 }
  0x3e   : > { %1280 = vmatprep.subr.bf16.mxu0 %v1531_v2  ;;  %1277 = vmatmul.mubr.msk.bf16.vlgmr.msra.gmra.mxu1 %vm408_vm2, %v810_v49 }
  0x44   : > { %1271 = vmatmul.mubr.msk.bf16.vlgmr.msra.gmra.mxu0 %vm408_vm2, %v1379_v21 }
  0x45   : > { %1281 = vmatpush3.bf16.msra.mxu0 %v869_v51  ;;  %1282 = vmatprep.mubr.msk.bf16.mxu0 %vm1532_vm1, %v1531_v2 }
  0x4c   : > { %1283 = vmatmul.mubr.msk.bf16.vlgmr.msra.gmra.mxu0 %vm408_vm2, %v864_v54 }
  0xe5   : > { %v496_v55 = vpop.f32.mrf.mxu1 }
  0xe7   : > { %v1242_v56 = vpop.f32.mrf.mxu1 }
  0xe9   : > { %v499_v57 = vpop.f32.mrf.mxu1 }
  0xeb   : > { %v1243_v58 = vpop.f32.mrf.mxu1 }
  0xec   : > { %v450_v59 = vpop.f32.mrf.mxu0 }
  0xed   : > { %v497_v8 = vadd.f32 %v496_v55, %v450_v59 }
  0xee   : > { %v1236_v60 = vpop.f32.mrf.mxu0  ;;  %v608_v61 = vpop.f32.mrf.mxu1 }
  0xf0   : > { %v453_v62 = vpop.f32.mrf.mxu0  ;;  %v1254_v63 = vpop.f32.mrf.mxu1 }
  0xf1   : > { %v500_v14 = vadd.f32 %v499_v57, %v453_v62 }
  0xf2   : > { %v1237_v0 = vpop.f32.mrf.mxu0  ;;  %v611_v1 = vpop.f32.mrf.mxu1 }
  0xf4   : > { %v549_v3 = vpop.f32.mrf.mxu0  ;;  %v1255_v4 = vpop.f32.mrf.mxu1 }
  0xf5   : > { %v556_v11 = vadd.f32 %v549_v3, %v497_v8 }
  0xf6   : > { %v1248_v2 = vpop.f32.mrf.mxu0  ;;  %v727_v5 = vpop.f32.mrf.mxu1 }
  0xf7   : > { %v615_v17 = vadd.f32 %v608_v61, %v556_v11 }
  0xf8   : > { %v552_v6 = vpop.f32.mrf.mxu0  ;;  %v1266_v7 = vpop.f32.mrf.mxu1 }
  0xf9   : > { %v557_v18 = vadd.f32 %v552_v6, %v500_v14 }
  0xfa   : > { %v1249_v9 = vpop.f32.mrf.mxu0  ;;  %v730_v10 = vpop.f32.mrf.mxu1 }
  0xfb   : > { %v616_v24 = vadd.f32 %v611_v1, %v557_v18 }
  0xfc   : > { %v673_v12 = vpop.f32.mrf.mxu0  ;;  %v1267_v13 = vpop.f32.mrf.mxu1 }
  0xfd   : > { %v680_v21 = vadd.f32 %v673_v12, %v615_v17 }
  0xfe   : > { %v1260_v15 = vpop.f32.mrf.mxu0  ;;  %v851_v16 = vpop.f32.mrf.mxu1 }
  0xff   : > { %v734_v27 = vadd.f32 %v727_v5, %v680_v21 }
 0x100   : > { %v676_v19 = vpop.f32.mrf.mxu0  ;;  %v1278_v20 = vpop.f32.mrf.mxu1 }
 0x101   : > { %v681_v28 = vadd.f32 %v676_v19, %v616_v24 }
 0x102   : > { %v1261_v22 = vpop.f32.mrf.mxu0  ;;  %v854_v23 = vpop.f32.mrf.mxu1 }
 0x103   : > { %v735_v32 = vadd.f32 %v730_v10, %v681_v28 }
 0x104   : > { %v786_v25 = vpop.f32.mrf.mxu0  ;;  %v1279_v26 = vpop.f32.mrf.mxu1 }
 0x105   : > { %v793_v30 = vadd.f32 %v786_v25, %v734_v27 }
 0x106   : > { %v1272_v29 = vpop.f32.mrf.mxu0 }
 0x107   : > { %v858_v34 = vadd.f32 %v851_v16, %v793_v30 }
 0x108   : > { %v789_v31 = vpop.f32.mrf.mxu0 }
 0x109   : > { %v794_v35 = vadd.f32 %v789_v31, %v735_v32 }
 0x10a   : > { %v1273_v33 = vpop.f32.mrf.mxu0 }
 0x10b   : > { %v859_v39 = vadd.f32 %v854_v23, %v794_v35 }
 0x10c   : > { %v905_v36 = vpop.f32.mrf.mxu0 }
 0x10d   : > { %v912_v37 = vadd.f32 %v905_v36, %v858_v34 }
 0x10e   : > { %v1284_v38 = vpop.f32.mrf.mxu0 }
 0x10f   : > { %914 = vst [vmem:[%s336_s7] sm:$0xff] %v912_v37  ;;  %v923_v43 = vmul.f32 %v912_v37, %v912_v37 }
 0x110   : > { %v908_v40 = vpop.f32.mrf.mxu0 }
 0x111   : > { %v913_v41 = vadd.f32 %v908_v40, %v859_v39 }
 0x112   : > { %v1285_v42 = vpop.f32.mrf.mxu0 }
 0x113   : > { %915 = vst [vmem:[%s336_s7 + $0x8] sm:$0xff] %v913_v41  ;;  %v916_v44 = vadd.f32 %v913_v41, %v912_v37  ;;  %v924_v45 = vmul.f32 %v913_v41, %v913_v41 }
 0x114   : > { %1394 = shalt.err (!%p1391_p10)
}
 0x115   : > { %s1395_s8 = scalar_lea.hbm %s1757_s9, 256  ;;  %s1399_s12 = scalar_lea.hbm %s1887_s4, 8192 }
 0x116   : > { %p1396_p11 = scmp.ne.s32.totalorder %s1757_s9, %s1395_s8  ;;  %p1400_p0 = scmp.lt.s32.totalorder %s1757_s9, %s1887_s4 }
 0x117   : > { %p1401_p1 = scmp.lt.s32.totalorder %s1399_s12, %s1395_s8 }
 0x118   : > { %p1397_p12 = pnand %p1396_p11, %p1626_p3 }
 0x119   : > { %p1402_p2 = por %p1401_p1, %p1400_p0 }
 0x11a   : > { %p1398_p13 = pneg %p1397_p12 }
 0x11c   : > { %p1403_p4 = pnand %p1402_p2, %p1398_p13 }
 0x11e   : > { %1406 = shalt.err (!%p1403_p4)
}
 0x11f   : > { %s1534_s17 = smov 128   ;;  %s1535_s13 = smov 8   ;;  %v917_v46 = vrot.slane %v916_v44, 4  ;;  %v925_v47 = vadd.f32 %v924_v45, %v923_v43 }
 0x120   : > { %1290 = dma.vmem_to_hbm [thread:$0]  (%p1626_p3), %s1752_s0, 256, %s1757_s9, %s935_s14, %s1534_s17, %s1534_s17, %s1535_s13  }
 0x121   : > { %s1208_s19 = sshll.u32 %s1517_s25, 4  ;;  %v918_v48 = vadd.f32 %v917_v46, %v916_v44  ;;  %v926_v49 = vrot.slane %v925_v47, 4  ;;  %s1901_s8 = sadd.s32 4294967295, %s1529_s28  }
 0x122   : > { %s972_s16 = sadd.s32 %s1513_s24, %s1208_s19  ;;  %s1786_s30 = sand.u32 1, %s1901_s8  }
 0x123   : > { %v919_v50 = vrot.slane %v918_v48, 2  ;;  %v927_v51 = vadd.f32 %v926_v49, %v925_v47  ;;  %s1209_s7 = sshll.u32 %s972_s16, 4  ;;  %s342_s12 = scalar_lea.vmem [#allocation4], %s1747_s18 }
 0x124   : > { %s976_s29 = sshll.u32 %s342_s12, 4  ;;  %s1894_s0 = scalar_lea.vmem [#allocation6], %s1747_s18  ;;  %s1797_s29 = int_to_ptr.vmem [resolvable:$true] %s976_s29 }
 0x125   : > { %v928_v52 = vrot.slane %v927_v51, 2  ;;  %v920_v53 = vadd.f32 %v919_v50, %v918_v48  ;;  %s991_s25 = sshll.u32 %s1894_s0, 4  ;;  %s1795_s24 = scalar_lea.hbm %s1888_s5, %s1209_s7  ;;  %s1804_s25 = int_to_ptr.vmem [resolvable:$true] %s991_s25 }
 0x126   : > { %s1802_s13 = scalar_lea.hbm %s1889_s6, %s1209_s7  ;;  %s940_s19 = scalar_lea.sflag [#allocation5], %s1786_s30 }
 0x127   : > { %v921_v54 = vrot.slane %v920_v53, 1  ;;  %v929_v55 = vadd.f32 %v928_v52, %v927_v51  ;;  %s1407_s16 = scalar_lea.vmem %s1797_s29, 16  ;;  %s1536_s8 = smov [#allocation4]  }
 0x128   : > { %p1408_p5 = scmp.ne.s32.totalorder %s1797_s29, %s1407_s16  ;;  %s1411_s9 = sshll.u32 %s1536_s8, 4  ;;  %s1412_s9 = int_to_ptr.vmem [resolvable:$false] %s1411_s9 }
 0x129   : > { %v922_v56 = vadd.f32 %v921_v54, %v920_v53  ;;  %v930_v57 = vrot.slane %v929_v55, 1  ;;  %s1413_s14 = scalar_lea.vmem %s1412_s9, 32  ;;  %p1414_p9 = scmp.lt.s32.totalorder %s1797_s29, %s1412_s9 }
 0x12a   : > { %p1409_p6 = pnand %p1408_p5, %p1626_p3  ;;  %p1415_p10 = scmp.lt.s32.totalorder %s1413_s14, %s1407_s16 }
 0x12b   : > { %932 = vst [vmem:[%s342_s12] sm:$0x1] %v922_v56  ;;  %v931_v58 = vadd.f32 %v930_v57, %v929_v55 }
 0x12c   : > { %p1410_p7 = pneg %p1409_p6  ;;  %p1416_p11 = por %p1415_p10, %p1414_p9 }
 0x12e   : > { %p1417_p12 = pnand %p1416_p11, %p1410_p7 }
 0x130   : > { %1420 = shalt.err (!%p1417_p12)
}
 0x131   : > { %s1421_s7 = scalar_lea.hbm %s1795_s24, 16  ;;  %s1425_s17 = scalar_lea.hbm %s1888_s5, 512 }
 0x132   : > { %p1422_p13 = scmp.ne.s32.totalorder %s1795_s24, %s1421_s7  ;;  %p1426_p2 = scmp.lt.s32.totalorder %s1795_s24, %s1888_s5 }
 0x133   : > { %p1427_p4 = scmp.lt.s32.totalorder %s1425_s17, %s1421_s7 }
 0x134   : > { %p1423_p0 = pnand %p1422_p13, %p1626_p3 }
 0x135   : > { %p1428_p5 = por %p1427_p4, %p1426_p2 }
 0x136   : > { %p1424_p1 = pneg %p1423_p0 }
 0x138   : > { %p1429_p6 = pnand %p1428_p5, %p1424_p1 }
 0x13a   : > { %1432 = shalt.err (!%p1429_p6)
}
 0x13b   : > { %1291 = dma.vmem_to_hbm [thread:$0]  (%p1626_p3), %s1797_s29, 16, %s1795_s24, %s940_s19  }
 0x13c   : > { %s1902_s16 = scalar_lea.vmem [#allocation6], %s1747_s18  ;;  %s1433_s0 = scalar_lea.vmem %s1804_s25, 16 }
 0x13d   : > { %933 = vst [vmem:[%s1902_s16] sm:$0x1] %v931_v58  ;;  %p1434_p7 = scmp.ne.s32.totalorder %s1804_s25, %s1433_s0  ;;  %s1537_s9 = smov [#allocation6]  }
 0x13e   : > { %s1437_s14 = sshll.u32 %s1537_s9, 4  ;;  %s1438_s14 = int_to_ptr.vmem [resolvable:$false] %s1437_s14 }
 0x13f   : > { %p1435_p9 = pnand %p1434_p7, %p1626_p3  ;;  %s1439_s7 = scalar_lea.vmem %s1438_s14, 32 }
 0x140   : > { %p1440_p11 = scmp.lt.s32.totalorder %s1804_s25, %s1438_s14  ;;  %p1441_p12 = scmp.lt.s32.totalorder %s1439_s7, %s1433_s0 }
 0x141   : > { %p1436_p10 = pneg %p1435_p9 }
 0x142   : > { %p1442_p13 = por %p1441_p12, %p1440_p11 }
 0x144   : > { %p1443_p0 = pnand %p1442_p13, %p1436_p10 }
 0x146   : > { %1446 = shalt.err (!%p1443_p0)
}
 0x147   : > { %s1447_s18 = scalar_lea.hbm %s1802_s13, 16  ;;  %s1451_s12 = scalar_lea.hbm %s1889_s6, 512 }
 0x148   : > { %p1448_p1 = scmp.ne.s32.totalorder %s1802_s13, %s1447_s18  ;;  %p1452_p5 = scmp.lt.s32.totalorder %s1802_s13, %s1889_s6 }
 0x149   : > { %p1453_p6 = scmp.lt.s32.totalorder %s1451_s12, %s1447_s18 }
 0x14a   : > { %p1449_p2 = pnand %p1448_p1, %p1626_p3 }
 0x14b   : > { %p1454_p7 = por %p1453_p6, %p1452_p5 }
 0x14c   : > { %p1450_p4 = pneg %p1449_p2 }
 0x14e   : > { %p1455_p9 = pnand %p1454_p7, %p1450_p4 }
 0x150   : > { %1458 = shalt.err (!%p1455_p9)
}
 0x151   : > { %1292 = dma.vmem_to_hbm [thread:$0]  (%p1626_p3), %s1804_s25, 16, %s1802_s13, %s940_s19  }
 0x152 PF: > { %p1306_p10 = scmp.ge.s32.totalorder %s1529_s28, 2  ;;  %s1003_s8 = sand.u32 1, %s1501_s21  }
 0x153   : > { %s1004_s16 = scalar_lea.sflag [#allocation3], %s1003_s8 }
 0x154   : > { %p1297_p11 = pnand %p1306_p10, %p1637_p8 }
 0x156   : > { %p1298_p12 = pneg %p1297_p11 }
 0x158   : > { %1492 = dma.done.wait (%p1298_p12), %s1004_s16, 256  }
 0x159   : > { %1494 = vsyncadd (%p1298_p12), %s1004_s16, 4294967040  ;;  %s1903_s0 = sadd.s32 4294967294, %s1529_s28  }
 0x15a   : > { %s1012_s10 = sand.u32 1, %s1903_s0  }
 0x15b   : > { %s1013_s9 = scalar_lea.sflag [#allocation5], %s1012_s10 }
 0x15c   : > { %1496 = dma.done.wait (%p1298_p12), %s1013_s9, 32  }
 0x15d   : > { %1498 = vsyncadd (%p1298_p12), %s1013_s9, 4294967264  ;;  %s23_s28 = sadd.s32 1, %s1529_s28   ;;  %s1904_s11 = sld [smem:[#allocation9_spill]] }
 0x15e   : > { %p20_p3 = scmp.ge.s32.totalorder %s23_s28, 34   ;;  %s1905_s30 = sld [smem:[#allocation10_spill]] }
 0x15f   : > { %s1906_s21 = smov %s1505_s22  ;;  %s1907_s22 = smov %s1509_s23 }
 0x160   : > { %s1908_s23 = smov %s1646_s15  ;;  %s1909_s24 = smov %s1521_s26 }
 0x161   : > { %s1910_s25 = smov %s1525_s27  ;;  %22 = sbr.rel (!%p20_p3) target bundleno = 9 (0x9), region = 117 }
 0x163   : > { %s1911_s26 = smov %s1904_s11 }
 0x164   : > { %s1912_s27 = smov %s1905_s30 }
 0x166   :  { %1025 = vsyncpa [#allocation3], 1 }
 0x167   :  { %1027 = vsyncpa [#allocation3 + $0x1], 1 }
 0x168   :  { %1028 = vsyncpa [#allocation5], 1 }
 0x169   :  { %1030 = vsyncpa [#allocation5 + $0x1], 1 }

</bundles_post_ra>
